<compile_context>
chip_gen: v7x
topology: tpu7x:2x2x1
jax: 0.10.0
libtpu: 0.0.40
codegen_flags: <defaults>
</compile_context>

<pallas_src>
import jax
import jax.numpy as jnp
from jax.experimental import pallas as pl
from jax.experimental.pallas import tpu as pltpu


def _cdiv(a, b):
    return (a + b - 1) // b


def _round_up(x, m):
    return ((x + m - 1) // m) * m


def _link_pred_kernel(h_ref, w_ref, b_ref, o_ref):
    # h_ref: (TM, L) VMEM packed-row tile of h (moving MXU operand)
    # w_ref: (L, F)  VMEM block-diagonal weight (tiny, stationary MXU operand)
    # b_ref: (1,)    SMEM bias scalar
    # o_ref: (TM, F) VMEM output tile
    acc = jnp.dot(h_ref[...], w_ref[...], preferred_element_type=jnp.float32)
    o_ref[...] = (acc + b_ref[0]).astype(o_ref.dtype)


def link_pred_forward(h, w, b):
    """Link_Pred.forward: (h @ w.T + b).squeeze().  h: (N, C) f32; w: (1, C); b: (1,)."""
    N, C = h.shape
    dtype = h.dtype

    # ---- fold factor: pack F original rows into one 128-lane packed row ------
    F = 1
    if 0 < C < 128 and 128 % C == 0:
        F = 128 // C                      # power of two
        while F > 1 and N % F:            # need F | N for a free (bitcast) reshape
            F //= 2
    L = C * F
    Np = N // F

    hp = h.reshape(Np, L)                 # row-major contiguous -> free reshape (no copy)
    if F > 1:
        # Block-diagonal weight: (hp @ wbd)[p, j] == h[p*F + j, :] @ w[0, :]
        wbd = jnp.kron(jnp.eye(F, dtype=dtype), w.reshape(C, 1).astype(dtype))
    else:
        wbd = w.reshape(C, 1).astype(dtype)

    # ---- tile size: ~2 MiB of h per grid step, capped by a VMEM budget -------
    in_row_vmem = _cdiv(L, 128) * 512     # f32 VMEM bytes per packed row (lane padded)
    out_row_vmem = _cdiv(F, 128) * 512
    rows_by_vmem = max(8, (8 * 1024 * 1024) // (in_row_vmem + out_row_vmem))
    rows_by_stream = max(8, (2 * 1024 * 1024) // (4 * L))
    target_rows = min(rows_by_vmem, rows_by_stream)

    steps = _cdiv(Np, target_rows)
    if steps == 1 and Np >= 256:
        steps = 2                         # keep both v7x TensorCores busy
    tm = _round_up(_cdiv(Np, steps), 8)
    grid = (_cdiv(Np, tm),)

    out2d = pl.pallas_call(
        _link_pred_kernel,
        out_shape=jax.ShapeDtypeStruct((Np, F), dtype),
        grid_spec=pltpu.PrefetchScalarGridSpec(
            num_scalar_prefetch=0,
            grid=grid,
            in_specs=[
                pl.BlockSpec((tm, L), lambda i: (i, 0)),             # h rows (streamed)
                pl.BlockSpec((L, F), lambda i: (0, 0)),              # tiny weight (resident)
                pl.BlockSpec(memory_space=pltpu.MemorySpace.SMEM),   # bias scalar
            ],
            out_specs=pl.BlockSpec((tm, F), lambda i: (i, 0)),
        ),
        compiler_params=pltpu.CompilerParams(
            dimension_semantics=("parallel",),       # shardable across v7x's 2 TCs
            vmem_limit_bytes=32 * 1024 * 1024,
        ),
        cost_estimate=pl.CostEstimate(
            flops=2 * N * C + N,
            transcendentals=0,
            bytes_accessed=4 * (N * C + N + L * F),
        ),
    )(hp, wbd, b)

    # (Np, F) -> (N,) -> torch-style .squeeze() ((N,) for N>1, scalar for N==1).
    return out2d.reshape(N).squeeze()


if __name__ == "__main__":
    key = jax.random.PRNGKey(0)
    k_h, k_w, k_b, k_w2, k_b2, k_h2, k_h3, k_h4 = jax.random.split(key, 8)

    # Small shapes consistent with the module: N=16 node/edge scores, in_channels=32.
    N, C = 16, 32
    h = jax.random.normal(k_h, (N, C), dtype=jnp.float32)
    bound = 1.0 / (C ** 0.5)
    w_lin = jax.random.uniform(k_w, (1, C), minval=-bound, maxval=bound, dtype=jnp.float32)
    b_lin = jax.random.uniform(k_b, (1,), minval=-bound, maxval=bound, dtype=jnp.float32)
    # self.linear_ (unused in forward) — initialized only for parity with __init__.
    _w_lin_ = jax.random.uniform(k_w2, (C, C), minval=-bound, maxval=bound, dtype=jnp.float32)
    _b_lin_ = jax.random.uniform(k_b2, (C,), minval=-bound, maxval=bound, dtype=jnp.float32)

    out = link_pred_forward(h, w_lin, b_lin)
    jax.block_until_ready(out)
    ref = (h @ w_lin.T + b_lin).squeeze()
    assert out.shape == (N,)
    assert jnp.allclose(out, ref, atol=1e-4, rtol=1e-4)

    # Folded multi-tile path with ragged last block (C=32 -> 4 rows per 128 lanes).
    N2, C2 = 2500, 32
    h2 = jax.random.normal(k_h2, (N2, C2), dtype=jnp.float32)
    b2d = 1.0 / (C2 ** 0.5)
    w2 = jax.random.uniform(k_w, (1, C2), minval=-b2d, maxval=b2d, dtype=jnp.float32)
    b2 = jax.random.uniform(k_b, (1,), minval=-b2d, maxval=b2d, dtype=jnp.float32)
    out2 = link_pred_forward(h2, w2, b2)
    jax.block_until_ready(out2)
    ref2 = (h2 @ w2.T + b2).squeeze()
    assert out2.shape == (N2,)
    assert jnp.allclose(out2, ref2, atol=1e-4, rtol=1e-4)

    # Lane-dense (C=128) multi-tile path, ragged row count.
    N3, C3 = 1000, 128
    h3 = jax.random.normal(k_h3, (N3, C3), dtype=jnp.float32)
    b3d = 1.0 / (C3 ** 0.5)
    w3 = jax.random.uniform(k_w, (1, C3), minval=-b3d, maxval=b3d, dtype=jnp.float32)
    b3 = jax.random.uniform(k_b, (1,), minval=-b3d, maxval=b3d, dtype=jnp.float32)
    out3 = link_pred_forward(h3, w3, b3)
    jax.block_until_ready(out3)
    ref3 = (h3 @ w3.T + b3).squeeze()
    assert out3.shape == (N3,)
    assert jnp.allclose(out3, ref3, atol=1e-4, rtol=1e-4)

    # Odd N with small C (fold factor falls back to 1) + N==1 scalar-squeeze path.
    N4, C4 = 999, 32
    h4 = jax.random.normal(k_h4, (N4, C4), dtype=jnp.float32)
    out4 = link_pred_forward(h4, w_lin, b_lin)
    jax.block_until_ready(out4)
    ref4 = (h4 @ w_lin.T + b_lin).squeeze()
    assert out4.shape == (N4,)
    assert jnp.allclose(out4, ref4, atol=1e-4, rtol=1e-4)

    out1 = link_pred_forward(h[:1], w_lin, b_lin)
    jax.block_until_ready(out1)
    assert out1.shape == ()
    assert jnp.allclose(out1, (h[:1] @ w_lin.T + b_lin).squeeze(), atol=1e-4, rtol=1e-4)

    print("KERNEL_OK")
</pallas_src>

<mosaic_0001>
module attributes {stable_mosaic.version = 11 : i64} {
  func.func @_link_pred_kernel(%arg0: i32, %arg1: memref<8x128xf32, #tpu.memory_space<vmem>>, %arg2: memref<128x4xf32, #tpu.memory_space<vmem>>, %arg3: memref<1xf32, #tpu.memory_space<smem>>, %arg4: memref<8x4xf32, #tpu.memory_space<vmem>>) attributes {dimension_semantics = [#tpu.dimension_semantics<parallel>], iteration_bounds = array<i64: 1>, scalar_prefetch = 0 : i64, scratch_operands = 0 : i64, tpu.core_type = #tpu.core_type<tc>, window_params = [{transform_indices = @transform_0, window_bounds = array<i64: 8, 128>}, {pipeline_mode = #tpu.pipeline_mode<synchronous>, transform_indices = @transform_1, window_bounds = array<i64: 128, 4>}, {transform_indices = @transform_2, window_bounds = array<i64: 1>}, {transform_indices = @transform_3, window_bounds = array<i64: 8, 4>}]} {
    %c0 = arith.constant 0 : index
    %c0_0 = arith.constant 0 : index
    %0 = vector.load %arg1[%c0, %c0_0] : memref<8x128xf32, #tpu.memory_space<vmem>>, vector<8x128xf32>
    %c0_1 = arith.constant 0 : index
    %c0_2 = arith.constant 0 : index
    %1 = vector.load %arg2[%c0_1, %c0_2] : memref<128x4xf32, #tpu.memory_space<vmem>>, vector<128x4xf32>
    %cst = arith.constant dense<0.000000e+00> : vector<8x4xf32>
    %2 = tpu.matmul %0, %1, %cst {dimension_numbers = #tpu.dot_dimension_numbers<[1], [0], [0], [1], [0, 0, 1, 1], [], []>} : vector<8x128xf32>, vector<128x4xf32>, vector<8x4xf32> -> vector<8x4xf32>
    %c0_3 = arith.constant 0 : index
    %3 = memref.load %arg3[%c0_3] : memref<1xf32, #tpu.memory_space<smem>>
    %4 = vector.broadcast %3 : f32 to vector<8x4xf32>
    %5 = arith.addf %2, %4 : vector<8x4xf32>
    %c0_4 = arith.constant 0 : index
    %c0_5 = arith.constant 0 : index
    %6 = vector.load %arg4[%c0_4, %c0_5] : memref<8x4xf32, #tpu.memory_space<vmem>>, vector<8x4xf32>
    tpu.vector_store %arg4[%c0_4, %c0_5], %5 {strides = array<i32>} : memref<8x4xf32, #tpu.memory_space<vmem>>, vector<8x4xf32>,
    return
  }
  func.func @transform_0(%arg0: i32) -> (i32, i32) {
    %c0_i32 = arith.constant 0 : i32
    %c0_i32_0 = arith.constant 0 : i32
    return %arg0, %c0_i32 : i32, i32
  }
  func.func @transform_1(%arg0: i32) -> (i32, i32) {
    %c0_i32 = arith.constant 0 : i32
    %c0_i32_0 = arith.constant 0 : i32
    %c0_i32_1 = arith.constant 0 : i32
    return %c0_i32, %c0_i32_0 : i32, i32
  }
  func.func @transform_2(%arg0: i32) -> i32 {
    %c0_i32 = arith.constant 0 : i32
    %c0_i32_0 = arith.constant 0 : i32
    return %c0_i32 : i32
  }
  func.func @transform_3(%arg0: i32) -> (i32, i32) {
    %c0_i32 = arith.constant 0 : i32
    %c0_i32_0 = arith.constant 0 : i32
    return %arg0, %c0_i32 : i32, i32
  }
}

</mosaic_0001>

<bundles_post_ra>
// kernel: tpu_custom_call.1
= control target key start
LH: loop header
LB: loop body
LE: loop exit
PB: predicated region body
PF: predicated region fallthrough
CT: control target
= control target key end

     0   :  { %9 = vsyncpa [#allocation4], 0  ;;  %v229_v2 = vmov 0.0|0.0   ;;  %vm230_vm0 = vmmov 0   ;;  %v231_v6 = vmov 0.0   ;;  %vm105_vm1 = vcmask 31744   ;;  %s321_s0 = inlined_call_operand.vmem [shape: f32[4,128], index: 0, kind: input, shape index: {}]   ;;  %s322_s1 = inlined_call_operand.vmem [shape: f32[128,4], index: 1, kind: input, shape index: {}]   ;;  %s323_s2 = inlined_call_operand.<no memory space> [shape: f32[1], index: 2, kind: input, shape index: {}]   ;;  %s324_s3 = inlined_call_operand.hbm [shape: f32[4,4], index: 3, kind: output, shape index: {}]  }
   0x1   :  { %v17_v0 = vld [vmem:[%s322_s1] sm:$0xff]  ;;  %v18_v1 = vld [vmem:[%s322_s1 + $0x8] sm:$0xff]  ;;  %175 = vmatprep.subr.bf16.mxu0 %v229_v2  ;;  %v19_v4 = vld [vmem:[%s322_s1 + $0x10] sm:$0xff]  ;;  %172 = vmatprep.mubr.msk.f32.mxu0 %vm230_vm0, %v231_v6  ;;  %v34_v27 = vstv %s323_s2 }
   0x2   :  { %v176_v3 = vpack.c.bf16 %v18_v1, %v17_v0  ;;  %v20_v5 = vld [vmem:[%s322_s1 + $0x18] sm:$0xff]  ;;  %v21_v8 = vld [vmem:[%s322_s1 + $0x20] sm:$0xff]  ;;  %v22_v9 = vld [vmem:[%s322_s1 + $0x28] sm:$0xff] }
   0x3   :  { %v179_v7 = vpack.c.bf16 %v20_v5, %v19_v4  ;;  %v182_v10 = vpack.c.bf16 %v22_v9, %v21_v8  ;;  %v23_v11 = vld [vmem:[%s322_s1 + $0x30] sm:$0xff]  ;;  %v24_v12 = vld [vmem:[%s322_s1 + $0x38] sm:$0xff]  ;;  %v25_v14 = vld [vmem:[%s322_s1 + $0x40] sm:$0xff] }
   0x4   :  { %177 = vmatpush3.bf16.msra.mxu0 %v176_v3  ;;  %v185_v13 = vpack.c.bf16 %v24_v12, %v23_v11  ;;  %v26_v15 = vld [vmem:[%s322_s1 + $0x48] sm:$0xff]  ;;  %v27_v17 = vld [vmem:[%s322_s1 + $0x50] sm:$0xff]  ;;  %v28_v18 = vld [vmem:[%s322_s1 + $0x58] sm:$0xff] }
   0x5   :  { %178 = vmatprep.subr.bf16.mxu0 %v229_v2  ;;  %v188_v16 = vpack.c.bf16 %v26_v15, %v25_v14  ;;  %v191_v19 = vpack.c.bf16 %v28_v18, %v27_v17  ;;  %v29_v20 = vld [vmem:[%s322_s1 + $0x60] sm:$0xff]  ;;  %v30_v21 = vld [vmem:[%s322_s1 + $0x68] sm:$0xff]  ;;  %v31_v23 = vld [vmem:[%s322_s1 + $0x70] sm:$0xff] }
   0x6   :  { %v194_v22 = vpack.c.bf16 %v30_v21, %v29_v20  ;;  %v32_v24 = vld [vmem:[%s322_s1 + $0x78] sm:$0xff]  ;;  %v16_v26 = vld [vmem:[%s321_s0] sm:$0xff] }
   0x7   :  { %v197_v25 = vpack.c.bf16 %v32_v24, %v31_v23 }
   0x8   :  { %180 = vmatpush3.bf16.msra.mxu0 %v179_v7 }
   0x9   :  { %181 = vmatprep.subr.bf16.mxu0 %v229_v2 }
   0xc   :  { %183 = vmatpush3.bf16.msra.mxu0 %v182_v10 }
   0xd   :  { %184 = vmatprep.subr.bf16.mxu0 %v229_v2 }
  0x10   :  { %186 = vmatpush3.bf16.msra.mxu0 %v185_v13 }
  0x11   :  { %187 = vmatprep.subr.bf16.mxu0 %v229_v2 }
  0x14   :  { %189 = vmatpush3.bf16.msra.mxu0 %v188_v16 }
  0x15   :  { %190 = vmatprep.subr.bf16.mxu0 %v229_v2 }
  0x18   :  { %192 = vmatpush3.bf16.msra.mxu0 %v191_v19 }
  0x19   :  { %193 = vmatprep.subr.bf16.mxu0 %v229_v2 }
  0x1c   :  { %195 = vmatpush3.bf16.msra.mxu0 %v194_v22 }
  0x1d   :  { %196 = vmatprep.subr.bf16.mxu0 %v229_v2 }
  0x20   :  { %198 = vmatpush3.bf16.msra.mxu0 %v197_v25 }
  0x23   :  { %173 = vmatmul.mubr.f32.vlgmr.msra.gmra.mrb[0].mxu0 %v16_v26 }
  0xf6   :  { %v101_v28 = vpop.f32.mrb[0].mxu0 }
  0xf7   :  { %v102_v29 = vadd.f32 %v101_v28, %v34_v27  ;;  %v174_v30 = vpop.f32.mrb[1].mxu0 }
  0xf9   :  { %106 = vst.msk [vmem:[#allocation3] sm:$0xff] %vm105_vm1, %v102_v29 }
  0xfa   :  { %111 = vsyncadd [#allocation4], 64  ;;  %s232_s1 = smov [#allocation3]  }
  0xfb   :  { %s112_s21 = sshll.u32 %s232_s1, 4  ;;  %s113_s21 = int_to_ptr.vmem [resolvable:$true] %s112_s21 }
  0xfc   :  { %s205_s22 = scalar_lea.vmem %s113_s21, 64  ;;  %s209_s23 = scalar_lea.vmem %s113_s21, 128 }
  0xfd   :  { %p206_p0 = scmp.ne.s32.totalorder %s113_s21, %s205_s22  ;;  %p210_p1 = scmp.lt.s32.totalorder %s113_s21, %s113_s21 }
  0xfe   :  { %p211_p2 = scmp.lt.s32.totalorder %s209_s23, %s205_s22 }
 0x100   :  { %p212_p3 = por %p211_p2, %p210_p1 }
 0x102   :  { %p213_p4 = pnand %p212_p3, %p206_p0 }
 0x104   :  { %216 = shalt.err (!%p213_p4)
}
 0x105   :  { %s217_s2 = scalar_lea.hbm %s324_s3, 64 }
 0x106   :  { %p218_p5 = scmp.ne.s32.totalorder %s324_s3, %s217_s2  ;;  %p221_p6 = scmp.lt.u32.totalorder %s217_s2, %s324_s3 }
 0x108   :  { %p223_p7 = pnand %p221_p6, %p218_p5 }
 0x10a   :  { %226 = shalt.err (!%p223_p7)
}
 0x10b   :  { %s233_s29 = smov 64   ;;  %s234_s30 = smov 4  }
 0x10c   :  { %118 = dma.vmem_to_hbm [thread:$0]  %s113_s21, 64, %s324_s3, [#allocation4], %s233_s29, %s233_s29, %s234_s30  }
 0x10d   :  { %227 = dma.done.wait [#allocation4], 128  }
 0x10e   :  { %228 = vsyncadd [#allocation4], 4294967168 }
 0x10f   :  { %122 = vsyncpa [#allocation4], 1 }

</bundles_post_ra>
